<compile_context>
chip_gen: v5e
topology: v5e:2x2
jax: 0.10.0
libtpu: 0.0.40
codegen_flags: <defaults>
</compile_context>

<pallas_src>
import functools

import jax
import jax.numpy as jnp
from jax.experimental import pallas as pl
from jax.experimental.pallas import tpu as pltpu

BN_EPS = 1e-5
_LANE = 128
_MAX_TILE_L = 512                      # lanes per L-tile (keeps VMEM tiny)
_VMEM_LIMIT = 32 * 1024 * 1024         # explicit budget; fits v5e/v6e/v7x


def _round_up(x, m):
    return (x + m - 1) // m * m


# ----------------------------------------------------------------------------
# Kernel helpers
# ----------------------------------------------------------------------------
def _conv1(xcol_ref, w1_ref):
    """k=3 conv == one MXU matmul on the im2col'd tile (lane-dense output)."""
    # xcol_ref block: (1, 3*Cin, TL) bf16 ; w1_ref: (Cmid, 3*Cin) bf16
    return jnp.dot(w1_ref[...], xcol_ref[0],
                   preferred_element_type=jnp.float32)        # (Cmid, TL) f32


def _lane_valid_mask(tile_l, seq_len):
    """(1, TL) f32 mask of lanes holding real (non length-padded) positions."""
    lane = jax.lax.broadcasted_iota(jnp.int32, (1, tile_l), 1)
    pos = pl.program_id(1) * tile_l + lane
    return (pos < seq_len).astype(jnp.float32)


def _is_first_step():
    return (pl.program_id(0) == 0) & (pl.program_id(1) == 0)


# ----------------------------------------------------------------------------
# Pass 1: per-channel sum / sum-of-squares of conv1 output  (BN1 batch stats)
# ----------------------------------------------------------------------------
def _stats1_kernel(xcol_ref, w1_ref, sum_ref, sq_ref, *, seq_len):
    @pl.when(_is_first_step())
    def _():
        sum_ref[...] = jnp.zeros_like(sum_ref)
        sq_ref[...] = jnp.zeros_like(sq_ref)

    h = _conv1(xcol_ref, w1_ref)                         # (Cmid, TL) f32
    mask = _lane_valid_mask(h.shape[-1], seq_len)
    hm = h * mask
    sum_ref[...] += jnp.sum(hm, axis=-1, keepdims=True)
    sq_ref[...] += jnp.sum(hm * h, axis=-1, keepdims=True)


# ----------------------------------------------------------------------------
# Pass 2: per-channel sum / sum-of-squares of conv2(relu(bn1(conv1 x)))
# ----------------------------------------------------------------------------
def _stats2_kernel(xcol_ref, w1_ref, w2_ref, s1_ref, t1_ref,
                   sum_ref, sq_ref, *, seq_len):
    @pl.when(_is_first_step())
    def _():
        sum_ref[...] = jnp.zeros_like(sum_ref)
        sq_ref[...] = jnp.zeros_like(sq_ref)

    h = _conv1(xcol_ref, w1_ref)
    z = jnp.maximum(h * s1_ref[...] + t1_ref[...], 0.0)           # BN1 + ReLU (f32)
    y = jnp.dot(w2_ref[...], z.astype(jnp.bfloat16),
                preferred_element_type=jnp.float32)               # (Cout, TL)
    mask = _lane_valid_mask(y.shape[-1], seq_len)
    ym = y * mask
    sum_ref[...] += jnp.sum(ym, axis=-1, keepdims=True)
    sq_ref[...] += jnp.sum(ym * y, axis=-1, keepdims=True)


# ----------------------------------------------------------------------------
# Pass 3: fully tileable fused forward (both grid axes parallel)
# ----------------------------------------------------------------------------
def _fused_out_kernel(xcol_ref, w1_ref, w2_ref, s1_ref, t1_ref,
                      s2_ref, t2_ref, o_ref):
    h = _conv1(xcol_ref, w1_ref)
    z = jnp.maximum(h * s1_ref[...] + t1_ref[...], 0.0)
    y = jnp.dot(w2_ref[...], z.astype(jnp.bfloat16),
                preferred_element_type=jnp.float32)
    o_ref[0] = jnp.maximum(y * s2_ref[...] + t2_ref[...], 0.0)    # (Cout, TL) f32


# ----------------------------------------------------------------------------
# pallas_call wrappers
# ----------------------------------------------------------------------------
def double_conv_pallas(xcol, w1m, w2m, g1, b1, g2, b2, *, seq_len):
    """xcol: (N, 3*Cin, Lpad) bf16 (im2col'd, lane-padded).

    Returns (N, Cout, Lpad) f32; caller slices off the padded tail.
    """
    n, kcin, l_pad = xcol.shape
    c_mid = w1m.shape[0]
    c_out = w2m.shape[0]
    tile_l = l_pad if l_pad <= _MAX_TILE_L else _MAX_TILE_L
    assert l_pad % tile_l == 0
    grid = (n, l_pad // tile_l)

    x_spec = pl.BlockSpec((1, kcin, tile_l), lambda i, j: (i, 0, j))
    w1_spec = pl.BlockSpec((c_mid, kcin), lambda i, j: (0, 0))
    w2_spec = pl.BlockSpec((c_out, c_mid), lambda i, j: (0, 0))

    def vec_spec(c):
        return pl.BlockSpec((c, 1), lambda i, j: (0, 0))

    def stat_shape(c):
        return jax.ShapeDtypeStruct((c, 1), jnp.float32)

    count = float(n * seq_len)

    def finalize(gamma, beta, s, sq):
        mean = s[:, 0] / count
        var = jnp.maximum(sq[:, 0] / count - mean * mean, 0.0)    # one-pass var
        inv = jax.lax.rsqrt(var + BN_EPS)
        scale = gamma * inv
        shift = beta - mean * scale
        return scale.reshape(-1, 1), shift.reshape(-1, 1)

    acc_params = pltpu.CompilerParams(
        dimension_semantics=("arbitrary", "arbitrary"),
        vmem_limit_bytes=_VMEM_LIMIT)
    par_params = pltpu.CompilerParams(
        dimension_semantics=("parallel", "parallel"),
        vmem_limit_bytes=_VMEM_LIMIT)

    # Pass 1: BN1 batch statistics.
    s1, sq1 = pl.pallas_call(
        functools.partial(_stats1_kernel, seq_len=seq_len),
        grid=grid,
        in_specs=[x_spec, w1_spec],
        out_specs=(vec_spec(c_mid), vec_spec(c_mid)),
        out_shape=(stat_shape(c_mid), stat_shape(c_mid)),
        compiler_params=acc_params,
    )(xcol, w1m)
    scale1, shift1 = finalize(g1, b1, s1, sq1)

    # Pass 2: BN2 batch statistics.
    s2, sq2 = pl.pallas_call(
        functools.partial(_stats2_kernel, seq_len=seq_len),
        grid=grid,
        in_specs=[x_spec, w1_spec, w2_spec, vec_spec(c_mid), vec_spec(c_mid)],
        out_specs=(vec_spec(c_out), vec_spec(c_out)),
        out_shape=(stat_shape(c_out), stat_shape(c_out)),
        compiler_params=acc_params,
    )(xcol, w1m, w2m, scale1, shift1)
    scale2, shift2 = finalize(g2, b2, s2, sq2)

    # Pass 3: fused forward, lane-dense output, megacore-parallel grid.
    out = pl.pallas_call(
        _fused_out_kernel,
        grid=grid,
        in_specs=[x_spec, w1_spec, w2_spec,
                  vec_spec(c_mid), vec_spec(c_mid),
                  vec_spec(c_out), vec_spec(c_out)],
        out_specs=pl.BlockSpec((1, c_out, tile_l), lambda i, j: (i, 0, j)),
        out_shape=jax.ShapeDtypeStruct((n, c_out, l_pad), jnp.float32),
        compiler_params=par_params,
    )(xcol, w1m, w2m, scale1, shift1, scale2, shift2)
    return out


# ----------------------------------------------------------------------------
# Glue (upsample / reflect pad / im2col) — plain JAX, fuses into one gather
# ----------------------------------------------------------------------------
def upsample_linear_x2(x):
    """1-D linear upsample, scale 2, align_corners=True. x: (N, C, L)."""
    N, C, L = x.shape
    Lo = 2 * L
    if L == 1:
        return jnp.repeat(x, 2, axis=-1)
    pos = jnp.arange(Lo, dtype=jnp.float32) * (L - 1) / (Lo - 1)
    i0 = jnp.floor(pos).astype(jnp.int32)
    i1 = jnp.minimum(i0 + 1, L - 1)
    frac = pos - i0.astype(jnp.float32)
    return x[..., i0] * (1.0 - frac) + x[..., i1] * frac


def reflect_pad_last(x, pad_left, pad_right):
    """Reflect pad (PyTorch 'reflect') along last dim. x: (N, C, L)."""
    L = x.shape[-1]
    idx = jnp.concatenate([
        jnp.arange(pad_left, 0, -1),
        jnp.arange(L),
        jnp.arange(L - 2, L - 2 - pad_right, -1),
    ]).astype(jnp.int32)
    return x[..., idx]


def _im2col_k3(x, l_pad):
    """x: (N, Cin, L) f32 -> (N, 3*Cin, l_pad) bf16 (zero-pad=1 conv taps)."""
    n, c, l = x.shape
    xp = jnp.pad(x, ((0, 0), (0, 0), (1, l_pad - l + 1)))
    taps = [xp[:, :, k:k + l_pad] for k in range(3)]   # x[l-1], x[l], x[l+1]
    return jnp.concatenate(taps, axis=1).astype(jnp.bfloat16)


class UpPallas:
    """Mirrors `Up(in_channels, out_channels, bilinear=True)`."""

    def __init__(self, in_channels, out_channels, key):
        mid_channels = in_channels // 2
        k1, k2 = jax.random.split(key)
        # Conv1d(k=3) weight stored as (Cmid, 3*Cin): w1[m, k*Cin + c] = W_torch[m, c, k]
        self.w1 = (jax.random.normal(k1, (mid_channels, 3 * in_channels),
                                     jnp.float32) * 0.1).astype(jnp.bfloat16)
        # Conv1d(k=1) weight stored as (Cout, Cmid)
        self.w2 = (jax.random.normal(k2, (out_channels, mid_channels),
                                     jnp.float32) * 0.1).astype(jnp.bfloat16)
        # BatchNorm affine params (PyTorch default init: weight=1, bias=0)
        self.g1 = jnp.ones((mid_channels,), jnp.float32)
        self.b1 = jnp.zeros((mid_channels,), jnp.float32)
        self.g2 = jnp.ones((out_channels,), jnp.float32)
        self.b2 = jnp.zeros((out_channels,), jnp.float32)

    @functools.partial(jax.jit, static_argnums=0)
    def __call__(self, x1, x2):
        # x1, x2: PyTorch-style (N, C, L)
        x1 = upsample_linear_x2(x1)
        diff = x2.shape[2] - x1.shape[2]
        # TODO(synk): assumes diff >= 0 and diff//2 <= L-1 (same as PyTorch path).
        x1 = reflect_pad_last(x1, diff // 2, diff - diff // 2)
        x = jnp.concatenate([x2, x1], axis=1)          # (N, Cin, L)
        seq_len = x.shape[2]
        if seq_len <= _MAX_TILE_L:
            l_pad = _round_up(seq_len, _LANE)
        else:
            l_pad = _round_up(seq_len, _MAX_TILE_L)
        # concat + conv zero-pad + lane pad all fold into one im2col gather.
        xcol = _im2col_k3(x, l_pad)
        y = double_conv_pallas(xcol, self.w1, self.w2,
                               self.g1, self.b1, self.g2, self.b2,
                               seq_len=seq_len)
        return y[:, :, :seq_len]                       # drop lane padding


# ----------------------------------------------------------------------------
# Pure-JAX f32 reference (same semantics) for a sanity check
# ----------------------------------------------------------------------------
def _bn_relu_ref(v, g, b):
    mean = jnp.mean(v, axis=(0, 2), keepdims=True)
    var = jnp.mean((v - mean) ** 2, axis=(0, 2), keepdims=True)
    vn = (v - mean) * jax.lax.rsqrt(var + BN_EPS)
    return jnp.maximum(vn * g.reshape(1, -1, 1) + b.reshape(1, -1, 1), 0.0)


def reference_up(up, x1, x2):
    x1 = upsample_linear_x2(x1)
    diff = x2.shape[2] - x1.shape[2]
    x1 = reflect_pad_last(x1, diff // 2, diff - diff // 2)
    x = jnp.concatenate([x2, x1], axis=1)
    n, cin, l = x.shape
    xp = jnp.pad(x, ((0, 0), (0, 0), (1, 1)))
    xcol = jnp.concatenate([xp[:, :, k:k + l] for k in range(3)], axis=1)
    h = jnp.einsum('mc,ncl->nml', up.w1.astype(jnp.float32), xcol)
    h = _bn_relu_ref(h, up.g1, up.b1)
    y = jnp.einsum('om,nml->nol', up.w2.astype(jnp.float32), h)
    return _bn_relu_ref(y, up.g2, up.b2)


if __name__ == "__main__":
    key = jax.random.PRNGKey(0)
    k_x1, k_x2, k_w = jax.random.split(key, 3)

    N = 2
    c1, l1 = 4, 7       # deeper feature map (upsampled 7 -> 14, padded to 16)
    c2, l2 = 4, 16      # skip connection
    in_channels = c1 + c2   # channels after concat
    out_channels = 4

    x1 = jax.random.normal(k_x1, (N, c1, l1), jnp.float32)
    x2 = jax.random.normal(k_x2, (N, c2, l2), jnp.float32)

    up = UpPallas(in_channels, out_channels, k_w)
    out = up(x1, x2)
    jax.block_until_ready(out)

    assert out.shape == (N, out_channels, l2), out.shape
    assert bool(jnp.all(jnp.isfinite(out)))

    ref = reference_up(up, x1, x2)
    max_err = float(jnp.max(jnp.abs(out - ref)))
    assert max_err < 0.1, f"max abs error vs f32 reference: {max_err}"
    print("KERNEL_OK")
</pallas_src>

<mosaic_0001>
module attributes {stable_mosaic.version = 11 : i64} {
  func.func @_stats1_kernel(%arg0: i32, %arg1: i32, %arg2: memref<1x24x128xbf16, #tpu.memory_space<vmem>>, %arg3: memref<4x24xbf16, #tpu.memory_space<vmem>>, %arg4: memref<4x1xf32, #tpu.memory_space<vmem>>, %arg5: memref<4x1xf32, #tpu.memory_space<vmem>>) attributes {dimension_semantics = [#tpu.dimension_semantics<arbitrary>, #tpu.dimension_semantics<arbitrary>], iteration_bounds = array<i64: 2, 1>, scalar_prefetch = 0 : i64, scratch_operands = 0 : i64, tpu.core_type = #tpu.core_type<tc>, window_params = [{transform_indices = @transform_0, window_bounds = array<i64: 1, 24, 128>}, {pipeline_mode = #tpu.pipeline_mode<synchronous>, transform_indices = @transform_1, window_bounds = array<i64: 4, 24>}, {pipeline_mode = #tpu.pipeline_mode<synchronous>, transform_indices = @transform_2, window_bounds = array<i64: 4, 1>}, {pipeline_mode = #tpu.pipeline_mode<synchronous>, transform_indices = @transform_3, window_bounds = array<i64: 4, 1>}]} {
    %c0_i32 = arith.constant 0 : i32
    %0 = arith.cmpi eq, %arg0, %c0_i32 : i32
    %c0_i32_0 = arith.constant 0 : i32
    %1 = arith.cmpi eq, %arg1, %c0_i32_0 : i32
    %2 = arith.andi %0, %1 : i1
    %3 = arith.extui %2 : i1 to i32
    %c0_i32_1 = arith.constant 0 : i32
    %4 = arith.cmpi ne, %3, %c0_i32_1 : i32
    scf.if %4 {
      %cst_16 = arith.constant 0.000000e+00 : f32
      %30 = vector.broadcast %cst_16 : f32 to vector<4x1xf32>
      %c0_17 = arith.constant 0 : index
      %c0_18 = arith.constant 0 : index
      %31 = vector.load %arg4[%c0_17, %c0_18] : memref<4x1xf32, #tpu.memory_space<vmem>>, vector<4x1xf32>
      tpu.vector_store %arg4[%c0_17, %c0_18], %30 {strides = array<i32>} : memref<4x1xf32, #tpu.memory_space<vmem>>, vector<4x1xf32>,
      %cst_19 = arith.constant 0.000000e+00 : f32
      %32 = vector.broadcast %cst_19 : f32 to vector<4x1xf32>
      %c0_20 = arith.constant 0 : index
      %c0_21 = arith.constant 0 : index
      %33 = vector.load %arg5[%c0_20, %c0_21] : memref<4x1xf32, #tpu.memory_space<vmem>>, vector<4x1xf32>
      tpu.vector_store %arg5[%c0_20, %c0_21], %32 {strides = array<i32>} : memref<4x1xf32, #tpu.memory_space<vmem>>, vector<4x1xf32>,
    } else {
    }
    %c0 = arith.constant 0 : index
    %c0_2 = arith.constant 0 : index
    %5 = vector.load %arg3[%c0, %c0_2] : memref<4x24xbf16, #tpu.memory_space<vmem>>, vector<4x24xbf16>
    %c0_3 = arith.constant 0 : index
    %c0_4 = arith.constant 0 : index
    %c0_5 = arith.constant 0 : index
    %6 = vector.load %arg2[%c0_3, %c0_4, %c0_5] : memref<1x24x128xbf16, #tpu.memory_space<vmem>>, vector<1x24x128xbf16>
    %7 = vector.shape_cast %6 : vector<1x24x128xbf16> to vector<24x128xbf16>
    %cst = arith.constant dense<0.000000e+00> : vector<4x128xf32>
    %8 = tpu.matmul %5, %7, %cst {dimension_numbers = #tpu.dot_dimension_numbers<[1], [0], [0], [1], [0, 0, 1, 1], [], []>} : vector<4x24xbf16>, vector<24x128xbf16>, vector<4x128xf32> -> vector<4x128xf32>
    %9 = tpu.iota {dimensions = array<i32: 1>} : vector<1x128xi32>
    %c128_i32 = arith.constant 128 : i32
    %10 = arith.muli %arg1, %c128_i32 : i32
    %11 = vector.broadcast %10 : i32 to vector<1x128xi32>
    %12 = arith.addi %11, %9 : vector<1x128xi32>
    %c16_i32 = arith.constant 16 : i32
    %13 = vector.broadcast %c16_i32 : i32 to vector<1x128xi32>
    %14 = arith.cmpi slt, %12, %13 : vector<1x128xi32>
    %15 = arith.extui %14 : vector<1x128xi1> to vector<1x128xi32>
    %16 = arith.sitofp %15 : vector<1x128xi32> to vector<1x128xf32>
    %17 = vector.broadcast %16 : vector<1x128xf32> to vector<4x128xf32>
    %18 = arith.mulf %8, %17 : vector<4x128xf32>
    %c0_6 = arith.constant 0 : index
    %c0_7 = arith.constant 0 : index
    %19 = vector.load %arg4[%c0_6, %c0_7] : memref<4x1xf32, #tpu.memory_space<vmem>>, vector<4x1xf32>
    %cst_8 = arith.constant dense<0.000000e+00> : vector<4xf32>
    %20 = vector.multi_reduction <add>, %18, %cst_8 [1] : vector<4x128xf32> to vector<4xf32>
    %21 = vector.shape_cast %20 : vector<4xf32> to vector<4x1xf32>
    %22 = arith.addf %19, %21 : vector<4x1xf32>
    %c0_9 = arith.constant 0 : index
    %c0_10 = arith.constant 0 : index
    %23 = vector.load %arg4[%c0_9, %c0_10] : memref<4x1xf32, #tpu.memory_space<vmem>>, vector<4x1xf32>
    tpu.vector_store %arg4[%c0_9, %c0_10], %22 {strides = array<i32>} : memref<4x1xf32, #tpu.memory_space<vmem>>, vector<4x1xf32>,
    %c0_11 = arith.constant 0 : index
    %c0_12 = arith.constant 0 : index
    %24 = vector.load %arg5[%c0_11, %c0_12] : memref<4x1xf32, #tpu.memory_space<vmem>>, vector<4x1xf32>
    %25 = arith.mulf %18, %8 : vector<4x128xf32>
    %cst_13 = arith.constant dense<0.000000e+00> : vector<4xf32>
    %26 = vector.multi_reduction <add>, %25, %cst_13 [1] : vector<4x128xf32> to vector<4xf32>
    %27 = vector.shape_cast %26 : vector<4xf32> to vector<4x1xf32>
    %28 = arith.addf %24, %27 : vector<4x1xf32>
    %c0_14 = arith.constant 0 : index
    %c0_15 = arith.constant 0 : index
    %29 = vector.load %arg5[%c0_14, %c0_15] : memref<4x1xf32, #tpu.memory_space<vmem>>, vector<4x1xf32>
    tpu.vector_store %arg5[%c0_14, %c0_15], %28 {strides = array<i32>} : memref<4x1xf32, #tpu.memory_space<vmem>>, vector<4x1xf32>,
    return
  }
  func.func @transform_0(%arg0: i32, %arg1: i32) -> (i32, i32, i32) {
    %c0_i32 = arith.constant 0 : i32
    %c0_i32_0 = arith.constant 0 : i32
    return %arg0, %c0_i32, %arg1 : i32, i32, i32
  }
  func.func @transform_1(%arg0: i32, %arg1: i32) -> (i32, i32) {
    %c0_i32 = arith.constant 0 : i32
    %c0_i32_0 = arith.constant 0 : i32
    %c0_i32_1 = arith.constant 0 : i32
    return %c0_i32, %c0_i32_0 : i32, i32
  }
  func.func @transform_2(%arg0: i32, %arg1: i32) -> (i32, i32) {
    %c0_i32 = arith.constant 0 : i32
    %c0_i32_0 = arith.constant 0 : i32
    %c0_i32_1 = arith.constant 0 : i32
    return %c0_i32, %c0_i32_0 : i32, i32
  }
  func.func @transform_3(%arg0: i32, %arg1: i32) -> (i32, i32) {
    %c0_i32 = arith.constant 0 : i32
    %c0_i32_0 = arith.constant 0 : i32
    %c0_i32_1 = arith.constant 0 : i32
    return %c0_i32, %c0_i32_0 : i32, i32
  }
}

module attributes {stable_mosaic.version = 11 : i64} {
  func.func @_fused_out_kernel(%arg0: i32, %arg1: i32, %arg2: memref<1x24x128xbf16, #tpu.memory_space<vmem>>, %arg3: memref<4x24xbf16, #tpu.memory_space<vmem>>, %arg4: memref<4x4xbf16, #tpu.memory_space<vmem>>, %arg5: memref<4x1xf32, #tpu.memory_space<vmem>>, %arg6: memref<4x1xf32, #tpu.memory_space<vmem>>, %arg7: memref<4x1xf32, #tpu.memory_space<vmem>>, %arg8: memref<4x1xf32, #tpu.memory_space<vmem>>, %arg9: memref<1x4x128xf32, #tpu.memory_space<vmem>>) attributes {dimension_semantics = [#tpu.dimension_semantics<parallel>, #tpu.dimension_semantics<parallel>], iteration_bounds = array<i64: 2, 1>, scalar_prefetch = 0 : i64, scratch_operands = 0 : i64, tpu.core_type = #tpu.core_type<tc>, window_params = [{transform_indices = @transform_0, window_bounds = array<i64: 1, 24, 128>}, {pipeline_mode = #tpu.pipeline_mode<synchronous>, transform_indices = @transform_1, window_bounds = array<i64: 4, 24>}, {pipeline_mode = #tpu.pipeline_mode<synchronous>, transform_indices = @transform_2, window_bounds = array<i64: 4, 4>}, {pipeline_mode = #tpu.pipeline_mode<synchronous>, transform_indices = @transform_3, window_bounds = array<i64: 4, 1>}, {pipeline_mode = #tpu.pipeline_mode<synchronous>, transform_indices = @transform_4, window_bounds = array<i64: 4, 1>}, {pipeline_mode = #tpu.pipeline_mode<synchronous>, transform_indices = @transform_5, window_bounds = array<i64: 4, 1>}, {pipeline_mode = #tpu.pipeline_mode<synchronous>, transform_indices = @transform_6, window_bounds = array<i64: 4, 1>}, {transform_indices = @transform_7, window_bounds = array<i64: 1, 4, 128>}]} {
    %c0 = arith.constant 0 : index
    %c0_0 = arith.constant 0 : index
    %0 = vector.load %arg3[%c0, %c0_0] : memref<4x24xbf16, #tpu.memory_space<vmem>>, vector<4x24xbf16>
    %c0_1 = arith.constant 0 : index
    %c0_2 = arith.constant 0 : index
    %c0_3 = arith.constant 0 : index
    %1 = vector.load %arg2[%c0_1, %c0_2, %c0_3] : memref<1x24x128xbf16, #tpu.memory_space<vmem>>, vector<1x24x128xbf16>
    %2 = vector.shape_cast %1 : vector<1x24x128xbf16> to vector<24x128xbf16>
    %cst = arith.constant dense<0.000000e+00> : vector<4x128xf32>
    %3 = tpu.matmul %0, %2, %cst {dimension_numbers = #tpu.dot_dimension_numbers<[1], [0], [0], [1], [0, 0, 1, 1], [], []>} : vector<4x24xbf16>, vector<24x128xbf16>, vector<4x128xf32> -> vector<4x128xf32>
    %c0_4 = arith.constant 0 : index
    %c0_5 = arith.constant 0 : index
    %4 = vector.load %arg5[%c0_4, %c0_5] : memref<4x1xf32, #tpu.memory_space<vmem>>, vector<4x1xf32>
    %5 = vector.broadcast %4 : vector<4x1xf32> to vector<4x128xf32>
    %6 = arith.mulf %3, %5 : vector<4x128xf32>
    %c0_6 = arith.constant 0 : index
    %c0_7 = arith.constant 0 : index
    %7 = vector.load %arg6[%c0_6, %c0_7] : memref<4x1xf32, #tpu.memory_space<vmem>>, vector<4x1xf32>
    %8 = vector.broadcast %7 : vector<4x1xf32> to vector<4x128xf32>
    %9 = arith.addf %6, %8 : vector<4x128xf32>
    %cst_8 = arith.constant 0.000000e+00 : f32
    %10 = vector.broadcast %cst_8 : f32 to vector<4x128xf32>
    %11 = arith.maximumf %9, %10 : vector<4x128xf32>
    %c0_9 = arith.constant 0 : index
    %c0_10 = arith.constant 0 : index
    %12 = vector.load %arg4[%c0_9, %c0_10] : memref<4x4xbf16, #tpu.memory_space<vmem>>, vector<4x4xbf16>
    %13 = arith.truncf %11 : vector<4x128xf32> to vector<4x128xbf16>
    %cst_11 = arith.constant dense<0.000000e+00> : vector<4x128xf32>
    %14 = tpu.matmul %12, %13, %cst_11 {dimension_numbers = #tpu.dot_dimension_numbers<[1], [0], [0], [1], [0, 0, 1, 1], [], []>} : vector<4x4xbf16>, vector<4x128xbf16>, vector<4x128xf32> -> vector<4x128xf32>
    %c0_12 = arith.constant 0 : index
    %c0_13 = arith.constant 0 : index
    %15 = vector.load %arg7[%c0_12, %c0_13] : memref<4x1xf32, #tpu.memory_space<vmem>>, vector<4x1xf32>
    %16 = vector.broadcast %15 : vector<4x1xf32> to vector<4x128xf32>
    %17 = arith.mulf %14, %16 : vector<4x128xf32>
    %c0_14 = arith.constant 0 : index
    %c0_15 = arith.constant 0 : index
    %18 = vector.load %arg8[%c0_14, %c0_15] : memref<4x1xf32, #tpu.memory_space<vmem>>, vector<4x1xf32>
    %19 = vector.broadcast %18 : vector<4x1xf32> to vector<4x128xf32>
    %20 = arith.addf %17, %19 : vector<4x128xf32>
    %cst_16 = arith.constant 0.000000e+00 : f32
    %21 = vector.broadcast %cst_16 : f32 to vector<4x128xf32>
    %22 = arith.maximumf %20, %21 : vector<4x128xf32>
    %c0_17 = arith.constant 0 : index
    %c0_18 = arith.constant 0 : index
    %c0_19 = arith.constant 0 : index
    %23 = vector.load %arg9[%c0_17, %c0_18, %c0_19] : memref<1x4x128xf32, #tpu.memory_space<vmem>>, vector<1x4x128xf32>
    %24 = vector.shape_cast %23 : vector<1x4x128xf32> to vector<4x128xf32>
    %25 = vector.shape_cast %22 : vector<4x128xf32> to vector<1x4x128xf32>
    tpu.vector_store %arg9[%c0_17, %c0_18, %c0_19], %25 {strides = array<i32>} : memref<1x4x128xf32, #tpu.memory_space<vmem>>, vector<1x4x128xf32>,
    return
  }
  func.func @transform_0(%arg0: i32, %arg1: i32) -> (i32, i32, i32) {
    %c0_i32 = arith.constant 0 : i32
    %c0_i32_0 = arith.constant 0 : i32
    return %arg0, %c0_i32, %arg1 : i32, i32, i32
  }
  func.func @transform_1(%arg0: i32, %arg1: i32) -> (i32, i32) {
    %c0_i32 = arith.constant 0 : i32
    %c0_i32_0 = arith.constant 0 : i32
    %c0_i32_1 = arith.constant 0 : i32
    return %c0_i32, %c0_i32_0 : i32, i32
  }
  func.func @transform_2(%arg0: i32, %arg1: i32) -> (i32, i32) {
    %c0_i32 = arith.constant 0 : i32
    %c0_i32_0 = arith.constant 0 : i32
    %c0_i32_1 = arith.constant 0 : i32
    return %c0_i32, %c0_i32_0 : i32, i32
  }
  func.func @transform_3(%arg0: i32, %arg1: i32) -> (i32, i32) {
    %c0_i32 = arith.constant 0 : i32
    %c0_i32_0 = arith.constant 0 : i32
    %c0_i32_1 = arith.constant 0 : i32
    return %c0_i32, %c0_i32_0 : i32, i32
  }
  func.func @transform_4(%arg0: i32, %arg1: i32) -> (i32, i32) {
    %c0_i32 = arith.constant 0 : i32
    %c0_i32_0 = arith.constant 0 : i32
    %c0_i32_1 = arith.constant 0 : i32
    return %c0_i32, %c0_i32_0 : i32, i32
  }
  func.func @transform_5(%arg0: i32, %arg1: i32) -> (i32, i32) {
    %c0_i32 = arith.constant 0 : i32
    %c0_i32_0 = arith.constant 0 : i32
    %c0_i32_1 = arith.constant 0 : i32
    return %c0_i32, %c0_i32_0 : i32, i32
  }
  func.func @transform_6(%arg0: i32, %arg1: i32) -> (i32, i32) {
    %c0_i32 = arith.constant 0 : i32
    %c0_i32_0 = arith.constant 0 : i32
    %c0_i32_1 = arith.constant 0 : i32
    return %c0_i32, %c0_i32_0 : i32, i32
  }
  func.func @transform_7(%arg0: i32, %arg1: i32) -> (i32, i32, i32) {
    %c0_i32 = arith.constant 0 : i32
    %c0_i32_0 = arith.constant 0 : i32
    return %arg0, %c0_i32, %arg1 : i32, i32, i32
  }
}

module attributes {stable_mosaic.version = 11 : i64} {
  func.func @_stats2_kernel(%arg0: i32, %arg1: i32, %arg2: memref<1x24x128xbf16, #tpu.memory_space<vmem>>, %arg3: memref<4x24xbf16, #tpu.memory_space<vmem>>, %arg4: memref<4x4xbf16, #tpu.memory_space<vmem>>, %arg5: memref<4x1xf32, #tpu.memory_space<vmem>>, %arg6: memref<4x1xf32, #tpu.memory_space<vmem>>, %arg7: memref<4x1xf32, #tpu.memory_space<vmem>>, %arg8: memref<4x1xf32, #tpu.memory_space<vmem>>) attributes {dimension_semantics = [#tpu.dimension_semantics<arbitrary>, #tpu.dimension_semantics<arbitrary>], iteration_bounds = array<i64: 2, 1>, scalar_prefetch = 0 : i64, scratch_operands = 0 : i64, tpu.core_type = #tpu.core_type<tc>, window_params = [{transform_indices = @transform_0, window_bounds = array<i64: 1, 24, 128>}, {pipeline_mode = #tpu.pipeline_mode<synchronous>, transform_indices = @transform_1, window_bounds = array<i64: 4, 24>}, {pipeline_mode = #tpu.pipeline_mode<synchronous>, transform_indices = @transform_2, window_bounds = array<i64: 4, 4>}, {pipeline_mode = #tpu.pipeline_mode<synchronous>, transform_indices = @transform_3, window_bounds = array<i64: 4, 1>}, {pipeline_mode = #tpu.pipeline_mode<synchronous>, transform_indices = @transform_4, window_bounds = array<i64: 4, 1>}, {pipeline_mode = #tpu.pipeline_mode<synchronous>, transform_indices = @transform_5, window_bounds = array<i64: 4, 1>}, {pipeline_mode = #tpu.pipeline_mode<synchronous>, transform_indices = @transform_6, window_bounds = array<i64: 4, 1>}]} {
    %c0_i32 = arith.constant 0 : i32
    %0 = arith.cmpi eq, %arg0, %c0_i32 : i32
    %c0_i32_0 = arith.constant 0 : i32
    %1 = arith.cmpi eq, %arg1, %c0_i32_0 : i32
    %2 = arith.andi %0, %1 : i1
    %3 = arith.extui %2 : i1 to i32
    %c0_i32_1 = arith.constant 0 : i32
    %4 = arith.cmpi ne, %3, %c0_i32_1 : i32
    scf.if %4 {
      %cst_24 = arith.constant 0.000000e+00 : f32
      %41 = vector.broadcast %cst_24 : f32 to vector<4x1xf32>
      %c0_25 = arith.constant 0 : index
      %c0_26 = arith.constant 0 : index
      %42 = vector.load %arg7[%c0_25, %c0_26] : memref<4x1xf32, #tpu.memory_space<vmem>>, vector<4x1xf32>
      tpu.vector_store %arg7[%c0_25, %c0_26], %41 {strides = array<i32>} : memref<4x1xf32, #tpu.memory_space<vmem>>, vector<4x1xf32>,
      %cst_27 = arith.constant 0.000000e+00 : f32
      %43 = vector.broadcast %cst_27 : f32 to vector<4x1xf32>
      %c0_28 = arith.constant 0 : index
      %c0_29 = arith.constant 0 : index
      %44 = vector.load %arg8[%c0_28, %c0_29] : memref<4x1xf32, #tpu.memory_space<vmem>>, vector<4x1xf32>
      tpu.vector_store %arg8[%c0_28, %c0_29], %43 {strides = array<i32>} : memref<4x1xf32, #tpu.memory_space<vmem>>, vector<4x1xf32>,
    } else {
    }
    %c0 = arith.constant 0 : index
    %c0_2 = arith.constant 0 : index
    %5 = vector.load %arg3[%c0, %c0_2] : memref<4x24xbf16, #tpu.memory_space<vmem>>, vector<4x24xbf16>
    %c0_3 = arith.constant 0 : index
    %c0_4 = arith.constant 0 : index
    %c0_5 = arith.constant 0 : index
    %6 = vector.load %arg2[%c0_3, %c0_4, %c0_5] : memref<1x24x128xbf16, #tpu.memory_space<vmem>>, vector<1x24x128xbf16>
    %7 = vector.shape_cast %6 : vector<1x24x128xbf16> to vector<24x128xbf16>
    %cst = arith.constant dense<0.000000e+00> : vector<4x128xf32>
    %8 = tpu.matmul %5, %7, %cst {dimension_numbers = #tpu.dot_dimension_numbers<[1], [0], [0], [1], [0, 0, 1, 1], [], []>} : vector<4x24xbf16>, vector<24x128xbf16>, vector<4x128xf32> -> vector<4x128xf32>
    %c0_6 = arith.constant 0 : index
    %c0_7 = arith.constant 0 : index
    %9 = vector.load %arg5[%c0_6, %c0_7] : memref<4x1xf32, #tpu.memory_space<vmem>>, vector<4x1xf32>
    %10 = vector.broadcast %9 : vector<4x1xf32> to vector<4x128xf32>
    %11 = arith.mulf %8, %10 : vector<4x128xf32>
    %c0_8 = arith.constant 0 : index
    %c0_9 = arith.constant 0 : index
    %12 = vector.load %arg6[%c0_8, %c0_9] : memref<4x1xf32, #tpu.memory_space<vmem>>, vector<4x1xf32>
    %13 = vector.broadcast %12 : vector<4x1xf32> to vector<4x128xf32>
    %14 = arith.addf %11, %13 : vector<4x128xf32>
    %cst_10 = arith.constant 0.000000e+00 : f32
    %15 = vector.broadcast %cst_10 : f32 to vector<4x128xf32>
    %16 = arith.maximumf %14, %15 : vector<4x128xf32>
    %c0_11 = arith.constant 0 : index
    %c0_12 = arith.constant 0 : index
    %17 = vector.load %arg4[%c0_11, %c0_12] : memref<4x4xbf16, #tpu.memory_space<vmem>>, vector<4x4xbf16>
    %18 = arith.truncf %16 : vector<4x128xf32> to vector<4x128xbf16>
    %cst_13 = arith.constant dense<0.000000e+00> : vector<4x128xf32>
    %19 = tpu.matmul %17, %18, %cst_13 {dimension_numbers = #tpu.dot_dimension_numbers<[1], [0], [0], [1], [0, 0, 1, 1], [], []>} : vector<4x4xbf16>, vector<4x128xbf16>, vector<4x128xf32> -> vector<4x128xf32>
    %20 = tpu.iota {dimensions = array<i32: 1>} : vector<1x128xi32>
    %c128_i32 = arith.constant 128 : i32
    %21 = arith.muli %arg1, %c128_i32 : i32
    %22 = vector.broadcast %21 : i32 to vector<1x128xi32>
    %23 = arith.addi %22, %20 : vector<1x128xi32>
    %c16_i32 = arith.constant 16 : i32
    %24 = vector.broadcast %c16_i32 : i32 to vector<1x128xi32>
    %25 = arith.cmpi slt, %23, %24 : vector<1x128xi32>
    %26 = arith.extui %25 : vector<1x128xi1> to vector<1x128xi32>
    %27 = arith.sitofp %26 : vector<1x128xi32> to vector<1x128xf32>
    %28 = vector.broadcast %27 : vector<1x128xf32> to vector<4x128xf32>
    %29 = arith.mulf %19, %28 : vector<4x128xf32>
    %c0_14 = arith.constant 0 : index
    %c0_15 = arith.constant 0 : index
    %30 = vector.load %arg7[%c0_14, %c0_15] : memref<4x1xf32, #tpu.memory_space<vmem>>, vector<4x1xf32>
    %cst_16 = arith.constant dense<0.000000e+00> : vector<4xf32>
    %31 = vector.multi_reduction <add>, %29, %cst_16 [1] : vector<4x128xf32> to vector<4xf32>
    %32 = vector.shape_cast %31 : vector<4xf32> to vector<4x1xf32>
    %33 = arith.addf %30, %32 : vector<4x1xf32>
    %c0_17 = arith.constant 0 : index
    %c0_18 = arith.constant 0 : index
    %34 = vector.load %arg7[%c0_17, %c0_18] : memref<4x1xf32, #tpu.memory_space<vmem>>, vector<4x1xf32>
    tpu.vector_store %arg7[%c0_17, %c0_18], %33 {strides = array<i32>} : memref<4x1xf32, #tpu.memory_space<vmem>>, vector<4x1xf32>,
    %c0_19 = arith.constant 0 : index
    %c0_20 = arith.constant 0 : index
    %35 = vector.load %arg8[%c0_19, %c0_20] : memref<4x1xf32, #tpu.memory_space<vmem>>, vector<4x1xf32>
    %36 = arith.mulf %29, %19 : vector<4x128xf32>
    %cst_21 = arith.constant dense<0.000000e+00> : vector<4xf32>
    %37 = vector.multi_reduction <add>, %36, %cst_21 [1] : vector<4x128xf32> to vector<4xf32>
    %38 = vector.shape_cast %37 : vector<4xf32> to vector<4x1xf32>
    %39 = arith.addf %35, %38 : vector<4x1xf32>
    %c0_22 = arith.constant 0 : index
    %c0_23 = arith.constant 0 : index
    %40 = vector.load %arg8[%c0_22, %c0_23] : memref<4x1xf32, #tpu.memory_space<vmem>>, vector<4x1xf32>
    tpu.vector_store %arg8[%c0_22, %c0_23], %39 {strides = array<i32>} : memref<4x1xf32, #tpu.memory_space<vmem>>, vector<4x1xf32>,
    return
  }
  func.func @transform_0(%arg0: i32, %arg1: i32) -> (i32, i32, i32) {
    %c0_i32 = arith.constant 0 : i32
    %c0_i32_0 = arith.constant 0 : i32
    return %arg0, %c0_i32, %arg1 : i32, i32, i32
  }
  func.func @transform_1(%arg0: i32, %arg1: i32) -> (i32, i32) {
    %c0_i32 = arith.constant 0 : i32
    %c0_i32_0 = arith.constant 0 : i32
    %c0_i32_1 = arith.constant 0 : i32
    return %c0_i32, %c0_i32_0 : i32, i32
  }
  func.func @transform_2(%arg0: i32, %arg1: i32) -> (i32, i32) {
    %c0_i32 = arith.constant 0 : i32
    %c0_i32_0 = arith.constant 0 : i32
    %c0_i32_1 = arith.constant 0 : i32
    return %c0_i32, %c0_i32_0 : i32, i32
  }
  func.func @transform_3(%arg0: i32, %arg1: i32) -> (i32, i32) {
    %c0_i32 = arith.constant 0 : i32
    %c0_i32_0 = arith.constant 0 : i32
    %c0_i32_1 = arith.constant 0 : i32
    return %c0_i32, %c0_i32_0 : i32, i32
  }
  func.func @transform_4(%arg0: i32, %arg1: i32) -> (i32, i32) {
    %c0_i32 = arith.constant 0 : i32
    %c0_i32_0 = arith.constant 0 : i32
    %c0_i32_1 = arith.constant 0 : i32
    return %c0_i32, %c0_i32_0 : i32, i32
  }
  func.func @transform_5(%arg0: i32, %arg1: i32) -> (i32, i32) {
    %c0_i32 = arith.constant 0 : i32
    %c0_i32_0 = arith.constant 0 : i32
    %c0_i32_1 = arith.constant 0 : i32
    return %c0_i32, %c0_i32_0 : i32, i32
  }
  func.func @transform_6(%arg0: i32, %arg1: i32) -> (i32, i32) {
    %c0_i32 = arith.constant 0 : i32
    %c0_i32_0 = arith.constant 0 : i32
    %c0_i32_1 = arith.constant 0 : i32
    return %c0_i32, %c0_i32_0 : i32, i32
  }
}

</mosaic_0001>

<bundles_post_ra>
// kernel: a_call__.3
= control target key start
LH: loop header
LB: loop body
LE: loop exit
PB: predicated region body
PF: predicated region fallthrough
CT: control target
= control target key end

     0   :  { %s381_s12 = smov 0   ;;  %s383_s13 = smov 0   ;;  %s435_s0 = inlined_call_operand.vmem [shape: bf16[2,24,128], index: 0, kind: input, shape index: {}]   ;;  %s436_s1 = inlined_call_operand.vmem [shape: bf16[4,24], index: 1, kind: input, shape index: {}]   ;;  %s437_s2 = inlined_call_operand.vmem [shape: f32[4,1], index: 2, kind: output, shape index: {0}]   ;;  %s438_s3 = inlined_call_operand.vmem [shape: f32[4,1], index: 3, kind: output, shape index: {1}]  }
   0x1   :  { %s385_s14 = smov 0  }
   0x2 LB: > { %s26_s15 = sadd.s32 1, %s353_s13  ;;  %p295_p0 = scmp.ge.s32.totalorder %s357_s14, 1  ;;  %s357_s14 = sphi %s385_s14, %s14_s14   ;;  %s353_s13 = sphi %s383_s13, %s440_s13   ;;  %s349_s12 = sphi %s381_s12, %s439_s12  }
   0x3   : > { %p28_p1 = scmp.ge.s32.totalorder %s26_s15, 2  ;;  %p147_p2 = scmp.lt.s32.totalorder %s357_s14, 3 }
   0x5   : > { %s442_s15 = smov (%p28_p1, %s26_s15), 0  ;;  %p148_p3 = pnand %p295_p0, %p147_p2 }
   0x6   : > { %p169_p4 = scmp.lt.s32.totalorder (!%p148_p3), %s349_s12, 1  ;;  %p178_p5 = scmp.eq.s32.totalorder (!%p148_p3), %s349_s12, 0 }
   0x7   : > { %151 = sbr.rel (%p148_p3) target bundleno = 286 (0x11e), region = 28 }
   0xc   : > { %s444_s12 = smov (!%p169_p4, %s349_s12), 1  ;;  %183 = sbr.rel (!%p178_p5) target bundleno = 17 (0x11), region = 32  ;;  %vm184_vm0 = vcmask (%p178_p5), 3072   ;;  %v359_v0 = vmov (%p178_p5), 0.0  }
   0xd   : > { %s308_s16 = smul.u32 12, %s444_s12  ;;  %185 = vst.msk [vmem:[%s437_s2] sm:$0xf] (%p178_p5), %vm184_vm0, %v359_v0 }
   0xe   : > { %186 = vst.msk [vmem:[%s438_s3] sm:$0xf] (%p178_p5), %vm184_vm0, %v359_v0 }
   0xf   : > { %s176_s19 = scalar_lea.vmem %s435_s0, %s308_s16 }
  0x11 PF: > { %v190_v1 = vld [vmem:[%s176_s19 + $0x8] sm:$0xf]  ;;  %vm204_vm1 = vcmask 1043456   ;;  %v307_v5 = vld [vmem:[%s176_s19] sm:$0xff]  ;;  %vm200_vm2 = vcmask 195584   ;;  %v221_v7 = vlaneseq  ;;  %v360_v9 = vmov 0.0  }
  0x12   : > { %v196_v2 = vunpack.c.l.b16 %v190_v1  ;;  %v187_v6 = vld [vmem:[%s436_s1] sm:$0x3]  ;;  %vm235_vm4 = vcmask 3072  }
  0x13   : > { %v222_v8 = vand.u32 127, %v221_v7 }
  0x14   : > { %v198_v3 = vpack.c.b16 %v196_v2, %v196_v2  ;;  %v230_v17 = vld [vmem:[%s437_s2] sm:$0xf] }
  0x15   : > { %vm226_vm3 = vcmp.lt.s32.totalorder %v222_v8, 16  ;;  %v237_v20 = vld [vmem:[%s438_s3] sm:$0xf] }
  0x16   : > { %v206_v4 = vsel %vm204_vm1, %v198_v3, 0  ;;  %v303_v10 = vsel %vm226_vm3, 1.0, %v360_v9 }
  0x17   : > { %214 = vmatpush.bf16.msra.mxu0 %v206_v4 }
  0x1b   : > { %215 = vmatpush.bf16.msra.mxu0 %v307_v5 }
  0x1e   : > { %302 = vmatmul.msk.bf16.vlgmr.msra.gmra.mxu0 %vm200_vm2, %v187_v6 }
  0x9b   : > { %v217_v11 = vpop.f32.mrf.mxu0 }
  0x9c   : > { %v229_v12 = vmul.f32 %v303_v10, %v217_v11 }
  0x9e   : > { %v231_v13 = vsel %vm204_vm1, %v229_v12, 0.0  ;;  %v238_v14 = vmul.f32 %v229_v12, %v217_v11 }
  0x9f   : > { %232 = vadd.xlane.f32.xlu0 %v231_v13 }
  0xa0   : > { %v239_v16 = vsel %vm204_vm1, %v238_v14, 0.0 }
  0xa3   : > { %v219_v15 = vpop.f32.mrf.mxu0 }
  0xa7   : > { %240 = vadd.xlane.f32.xlu0 %v239_v16 }
 0x112   : > { %v233_v18 = vpop.xlane.xlu0 %232 }
 0x113   : > { %v234_v19 = vadd.f32 %v233_v18, %v230_v17 }
 0x115   : > { %236 = vst.msk [vmem:[%s437_s2] sm:$0xf] %vm235_vm4, %v234_v19 }
 0x11a   : > { %v241_v21 = vpop.xlane.xlu0 %240 }
 0x11b   : > { %v242_v22 = vadd.f32 %v241_v21, %v237_v20 }
 0x11d   : > { %243 = vst.msk [vmem:[%s438_s3] sm:$0xf] %vm235_vm4, %v242_v22 }
 0x11e PF: > { %s14_s14 = sadd.s32 1, %s357_s14   ;;  %s439_s12 = smov %s353_s13 }
 0x11f   : > { %p11_p6 = scmp.ge.s32.totalorder %s14_s14, 4   ;;  %s440_s13 = smov %s442_s15 }
 0x121   :  { %13 = sbr.rel (!%p11_p6) target bundleno = 2 (0x2), region = 66 }

// kernel: a_call__.5
= control target key start
LH: loop header
LB: loop body
LE: loop exit
PB: predicated region body
PF: predicated region fallthrough
CT: control target
= control target key end

     0   :  { %12 = vsyncpa [#allocation3], 0  ;;  %s795_s0 = inlined_call_operand.vmem [shape: bf16[2,24,128], index: 0, kind: input, shape index: {}]   ;;  %s796_s1 = inlined_call_operand.vmem [shape: bf16[4,24], index: 1, kind: input, shape index: {}]   ;;  %s797_s2 = inlined_call_operand.vmem [shape: bf16[4,4], index: 2, kind: input, shape index: {}]   ;;  %s798_s3 = inlined_call_operand.vmem [shape: f32[4,1], index: 3, kind: input, shape index: {}]   ;;  %s799_s4 = inlined_call_operand.vmem [shape: f32[4,1], index: 4, kind: input, shape index: {}]   ;;  %s800_s5 = inlined_call_operand.vmem [shape: f32[4,1], index: 5, kind: input, shape index: {}]   ;;  %s801_s6 = inlined_call_operand.vmem [shape: f32[4,1], index: 6, kind: input, shape index: {}]   ;;  %s802_s7 = inlined_call_operand.hbm [shape: f32[2,4,128], index: 7, kind: output, shape index: {}]  }
   0x1   :  { %14 = vsyncpa [#allocation3 + $0x1], 0  ;;  %s680_s24 = smov 0   ;;  %s682_s25 = smov 0  }
   0x2   :  { %s684_s26 = smov 0   ;;  %s686_s27 = smov 0  }
   0x3   :  { %s688_s28 = smov 0   ;;  %s690_s29 = smov 0  }
   0x4 LB: > { %s482_s30 = sadd.s32 4294967295, %s637_s29   ;;  %s483_s8 = sadd.s32 4294967294, %s637_s29   ;;  %s637_s29 = sphi %s690_s29, %s20_s29   ;;  %s633_s28 = sphi %s688_s28, %s809_s28   ;;  %s629_s27 = sphi %s686_s27, %s808_s27   ;;  %s625_s26 = sphi %s684_s26, %s807_s26   ;;  %s621_s25 = sphi %s682_s25, %s806_s25   ;;  %s617_s24 = sphi %s680_s24, %s805_s24  }
   0x5   : > { %s32_s9 = sadd.s32 1, %s633_s28  ;;  %s195_s10 = sadd.s32 1, %s625_s26 }
   0x6   : > { %p34_p0 = scmp.ge.s32.totalorder %s32_s9, 2  ;;  %p205_p1 = scmp.ne.s32.totalorder %s625_s26, %s621_s25 }
   0x7   : > { %p206_p2 = scmp.eq.s32.totalorder %s482_s30, 1  ;;  %p211_p3 = scmp.ne.s32.totalorder %s621_s25, %s617_s24 }
   0x8   : > { %s811_s9 = smov (%p34_p0, %s32_s9), 0  ;;  %p212_p5 = scmp.eq.s32.totalorder %s483_s8, 1 }
   0x9   : > { %p720_p4 = por %p206_p2, %p205_p1  ;;  %s190_s12 = ssub.s32 %s633_s28, %s811_s9 }
   0xa   : > { %p486_p6 = scmp.ge.s32.totalorder %s637_s29, 1  ;;  %p193_p7 = scmp.eq.s32.totalorder %s190_s12, 0 }
   0xb   : > { %p727_p8 = por %p212_p5, %p211_p3  ;;  %p259_p9 = scmp.lt.s32.totalorder %s637_s29, 3 }
   0xc   : > { %s733_s14 = scalar_select %p193_p7, %s625_s26, %s195_s10  }
   0xd   : > { %p260_p10 = pnand %p486_p6, %p259_p9 }
   0xe   : > { %p294_p11 = scmp.lt.s32.totalorder (!%p260_p10), %s629_s27, 1  ;;  %s291_s19 = sand.u32 (!%p260_p10), 1, %s621_s25  }
   0xf   : > { %263 = sbr.rel (%p260_p10) target bundleno = 312 (0x138), region = 48  ;;  %s487_s20 = sshll.u32 (!%p260_p10), %s291_s19, 2 }
  0x10   : > { %s293_s8 = scalar_lea.vmem (!%p260_p10), [#allocation2], %s487_s20  ;;  %s392_s15 = scalar_lea.sflag (!%p260_p10), [#allocation3], %s291_s19 }
  0x11   : > { %s405_s10 = sshll.u32 (!%p260_p10), %s293_s8, 4  ;;  %s579_s20 = scalar_lea.hbm (!%p260_p10), %s802_s7, 8  ;;  %s406_s10 = int_to_ptr.vmem [resolvable:$true] %s405_s10 }
  0x14   : > { %v337_v0 = vld [vmem:[%s798_s3] sm:$0xf]  ;;  %v639_v1 = vmov 0   ;;  %s295_s17 = scalar_select %p294_p11, %s629_s27, 1  ;;  %vm320_vm0 = vcmask 1043456   ;;  %vm316_vm1 = vcmask 195584  }
  0x15   : > { %557 = vset.pattern.permute.xlu0 %v639_v1  ;;  %558 = vset.pattern.permute.xlu1 %v639_v1  ;;  %v344_v3 = vld [vmem:[%s799_s4] sm:$0xf]  ;;  %vm358_vm2 = vcmask 1041408   ;;  %vm354_vm3 = vcmask 31744  }
  0x16   : > { %340 = vperm.xlu0 %557, %v337_v0   ;;  %s500_s18 = smul.u32 12, %s295_s17  ;;  %v303_v8 = vld [vmem:[%s796_s1] sm:$0x3] }
  0x17   : > { %v375_v9 = vld [vmem:[%s800_s5] sm:$0xf] }
  0x18   : > { %s301_s21 = scalar_lea.vmem %s795_s0, %s500_s18  ;;  %378 = vperm.xlu1 %558, %v375_v9   ;;  %v382_v10 = vld [vmem:[%s801_s6] sm:$0xf] }
  0x19   : > { %v306_v2 = vld [vmem:[%s301_s21 + $0x8] sm:$0xf]  ;;  %v499_v7 = vld [vmem:[%s301_s21] sm:$0xff]  ;;  %s496_s21 = sshll.u32 %s629_s27, 2 }
  0x1a   : > { %v312_v4 = vunpack.c.l.b16 %v306_v2  ;;  %v352_v20 = vld [vmem:[%s797_s2] sm:$0x3]  ;;  %s403_s30 = scalar_lea.hbm %s802_s7, %s496_s21 }
  0x1b   : > { %s407_s12 = sshll.u32 %s403_s30, 4  ;;  %s408_s12 = int_to_ptr.hbm [resolvable:$true] %s407_s12 }
  0x1c   : > { %v314_v5 = vpack.c.b16 %v312_v4, %v312_v4  ;;  %s573_s16 = sshra.s32 %s408_s12, 4  ;;  %s574_s16 = int_to_ptr.hbm [resolvable:$true] %s573_s16 }
  0x1d   : > { %s575_s27 = scalar_lea.hbm %s574_s16, 4  ;;  %p580_p1 = scmp.lt.s32.totalorder %s574_s16, %s802_s7 }
  0x1e   : > { %347 = vperm.xlu0 %557, %v344_v3   ;;  %v322_v6 = vsel %vm320_vm0, %v314_v5, 0  ;;  %p576_p12 = scmp.ne.s32.totalorder %s574_s16, %s575_s27  ;;  %p581_p2 = scmp.lt.s32.totalorder %s579_s20, %s575_s27 }
  0x1f   : > { %330 = vmatpush.bf16.msra.mxu0 %v322_v6 }
  0x20   : > { %385 = vperm.xlu1 %558, %v382_v10   ;;  %p577_p13 = pnand %p576_p12, %p720_p4  ;;  %p582_p3 = por %p581_p2, %p580_p1 }
  0x22   : > { %p578_p0 = pneg %p577_p13 }
  0x23   : > { %331 = vmatpush.bf16.msra.mxu0 %v499_v7 }
  0x24   : > { %p583_p5 = pnand %p582_p3, %p578_p0 }
  0x26   : > { %493 = vmatmul.msk.bf16.vlgmr.msra.gmra.mxu0 %vm316_vm1, %v303_v8 }
  0x88   : > { %v341_v11 = vpop.permute.xlu0 %340 }
  0x8a   : > { %v379_v21 = vpop.permute.xlu1 %378 }
  0x90   : > { %v348_v14 = vpop.permute.xlu0 %347 }
  0x92   : > { %v386_v24 = vpop.permute.xlu1 %385 }
  0xa3   : > { %v333_v12 = vpop.f32.mrf.mxu0 }
  0xa4   : > { %v343_v13 = vmul.f32 %v341_v11, %v333_v12 }
  0xa6   : > { %v350_v15 = vadd.f32 %v348_v14, %v343_v13 }
  0xa8   : > { %v351_v16 = vmax.f32 %v350_v15, 0.0 }
  0xaa   : > { %v353_v17 = vpack.c.bf16 %v351_v16, %v351_v16 }
  0xab   : > { %v335_v18 = vpop.f32.mrf.mxu0 }
  0xac   : > { %v360_v19 = vsel %vm358_vm2, %v353_v17, 0 }
  0xad   : > { %369 = vmatpush.bf16.msra.mxu1 %v360_v19 }
  0xb0   : > { %494 = vmatmul.msk.bf16.vlgmr.msra.gmra.mxu1 %vm354_vm3, %v352_v20 }
 0x12d   : > { %v371_v22 = vpop.f32.mrf.mxu1 }
 0x12e   : > { %v381_v23 = vmul.f32 %v379_v21, %v371_v22 }
 0x130   : > { %v388_v25 = vadd.f32 %v386_v24, %v381_v23 }
 0x132   : > { %v389_v26 = vmax.f32 %v388_v25, 0.0 }
 0x134   : > { %390 = vst [vmem:[%s293_s8] sm:$0xf] %v389_v26 }
 0x135   : > { %v373_v27 = vpop.f32.mrf.mxu1 }
 0x136   : > { %586 = shalt.err (!%p583_p5)
}
 0x137   : > { %501 = dma.vmem_to_hbm [thread:$0]  (%p720_p4), %s406_s10, 64, %s408_s12, %s392_s15  }
 0x138 PF: > { %p507_p6 = scmp.ge.s32.totalorder %s637_s29, 2  ;;  %s419_s19 = sand.u32 1, %s617_s24  }
 0x139   : > { %s420_s23 = scalar_lea.sflag [#allocation3], %s419_s19 }
 0x13a   : > { %p504_p7 = pnand %p507_p6, %p727_p8 }
 0x13c   : > { %p505_p9 = pneg %p504_p7 }
 0x13e   : > { %612 = dma.done.wait (%p505_p9), %s420_s23, 64  }
 0x13f   : > { %614 = vsyncadd (%p505_p9), %s420_s23, 4294967232  ;;  %s20_s29 = sadd.s32 1, %s637_s29   ;;  %s805_s24 = smov %s621_s25 }
 0x140   : > { %p17_p10 = scmp.ge.s32.totalorder %s20_s29, 4   ;;  %s806_s25 = smov %s625_s26 }
 0x141   : > { %s807_s26 = smov %s733_s14  ;;  %s808_s27 = smov %s633_s28 }
 0x142   : > { %s809_s28 = smov %s811_s9  ;;  %19 = sbr.rel (!%p17_p10) target bundleno = 4 (0x4), region = 83 }
 0x147   :  { %426 = vsyncpa [#allocation3], 1 }
 0x148   :  { %428 = vsyncpa [#allocation3 + $0x1], 1 }

// kernel: a_call__.4
= control target key start
LH: loop header
LB: loop body
LE: loop exit
PB: predicated region body
PF: predicated region fallthrough
CT: control target
= control target key end

     0   :  { %s519_s21 = smov 0   ;;  %s521_s22 = smov 0   ;;  %s582_s0 = inlined_call_operand.vmem [shape: bf16[2,24,128], index: 0, kind: input, shape index: {}]   ;;  %s583_s1 = inlined_call_operand.vmem [shape: bf16[4,24], index: 1, kind: input, shape index: {}]   ;;  %s584_s2 = inlined_call_operand.vmem [shape: bf16[4,4], index: 2, kind: input, shape index: {}]   ;;  %s585_s3 = inlined_call_operand.vmem [shape: f32[4,1], index: 3, kind: input, shape index: {}]   ;;  %s586_s4 = inlined_call_operand.vmem [shape: f32[4,1], index: 4, kind: input, shape index: {}]   ;;  %s587_s5 = inlined_call_operand.vmem [shape: f32[4,1], index: 5, kind: output, shape index: {0}]   ;;  %s588_s6 = inlined_call_operand.vmem [shape: f32[4,1], index: 6, kind: output, shape index: {1}]  }
   0x1   :  { %s523_s23 = smov 0  }
   0x2 LB: > { %s29_s24 = sadd.s32 1, %s475_s22  ;;  %p414_p0 = scmp.ge.s32.totalorder %s479_s23, 1  ;;  %s479_s23 = sphi %s523_s23, %s17_s23   ;;  %s475_s22 = sphi %s521_s22, %s590_s22   ;;  %s471_s21 = sphi %s519_s21, %s589_s21  }
   0x3   : > { %p31_p1 = scmp.ge.s32.totalorder %s29_s24, 2  ;;  %p222_p2 = scmp.lt.s32.totalorder %s479_s23, 3 }
   0x5   : > { %s592_s24 = smov (%p31_p1, %s29_s24), 0  ;;  %p223_p3 = pnand %p414_p0, %p222_p2 }
   0x6   : > { %p250_p4 = scmp.lt.s32.totalorder (!%p223_p3), %s471_s21, 1  ;;  %p259_p5 = scmp.eq.s32.totalorder (!%p223_p3), %s471_s21, 0 }
   0x7   : > { %226 = sbr.rel (%p223_p3) target bundleno = 424 (0x1a8), region = 40 }
   0xc   : > { %s594_s21 = smov (!%p250_p4, %s471_s21), 1  ;;  %264 = sbr.rel (!%p259_p5) target bundleno = 17 (0x11), region = 44  ;;  %vm265_vm0 = vcmask (%p259_p5), 3072   ;;  %v481_v0 = vmov (%p259_p5), 0.0  }
   0xd   : > { %s428_s25 = smul.u32 12, %s594_s21  ;;  %266 = vst.msk [vmem:[%s587_s5] sm:$0xf] (%p259_p5), %vm265_vm0, %v481_v0 }
   0xe   : > { %267 = vst.msk [vmem:[%s588_s6] sm:$0xf] (%p259_p5), %vm265_vm0, %v481_v0 }
   0xf   : > { %s257_s28 = scalar_lea.vmem %s582_s0, %s428_s25 }
  0x11 PF: > { %v271_v1 = vld [vmem:[%s257_s28 + $0x8] sm:$0xf]  ;;  %v302_v2 = vld [vmem:[%s585_s3] sm:$0xf]  ;;  %v482_v4 = vmov 0   ;;  %vm285_vm1 = vcmask 1043456   ;;  %v340_v20 = vlaneseq }
  0x12   : > { %v277_v3 = vunpack.c.l.b16 %v271_v1  ;;  %456 = vset.pattern.permute.xlu0 %v482_v4  ;;  %v427_v7 = vld [vmem:[%s257_s28] sm:$0xff]  ;;  %vm281_vm2 = vcmask 195584   ;;  %vm323_vm3 = vcmask 1041408   ;;  %vm319_vm4 = vcmask 31744  }
  0x13   : > { %305 = vperm.xlu0 %456, %v302_v2   ;;  %v309_v8 = vld [vmem:[%s586_s4] sm:$0xf]  ;;  %v341_v21 = vand.u32 127, %v340_v20  ;;  %v483_v22 = vmov 0.0   ;;  %vm354_vm6 = vcmask 3072  }
  0x14   : > { %v279_v5 = vpack.c.b16 %v277_v3, %v277_v3  ;;  %v268_v9 = vld [vmem:[%s583_s1] sm:$0x3] }
  0x15   : > { %v317_v19 = vld [vmem:[%s584_s2] sm:$0x3]  ;;  %vm345_vm5 = vcmp.lt.s32.totalorder %v341_v21, 16 }
  0x16   : > { %v287_v6 = vsel %vm285_vm1, %v279_v5, 0  ;;  %v423_v23 = vsel %vm345_vm5, 1.0, %v483_v22  ;;  %v349_v30 = vld [vmem:[%s587_s5] sm:$0xf] }
  0x17   : > { %295 = vmatpush.bf16.msra.mxu0 %v287_v6  ;;  %v356_v33 = vld [vmem:[%s588_s6] sm:$0xf] }
  0x1b   : > { %296 = vmatpush.bf16.msra.mxu0 %v427_v7  ;;  %312 = vperm.xlu0 %456, %v309_v8  }
  0x1e   : > { %421 = vmatmul.msk.bf16.vlgmr.msra.gmra.mxu0 %vm281_vm2, %v268_v9 }
  0x85   : > { %v306_v10 = vpop.permute.xlu0 %305 }
  0x8d   : > { %v313_v13 = vpop.permute.xlu0 %312 }
  0x9b   : > { %v298_v11 = vpop.f32.mrf.mxu0 }
  0x9c   : > { %v308_v12 = vmul.f32 %v306_v10, %v298_v11 }
  0x9e   : > { %v315_v14 = vadd.f32 %v313_v13, %v308_v12 }
  0xa0   : > { %v316_v15 = vmax.f32 %v315_v14, 0.0 }
  0xa2   : > { %v318_v16 = vpack.c.bf16 %v316_v15, %v316_v15 }
  0xa3   : > { %v300_v17 = vpop.f32.mrf.mxu0 }
  0xa4   : > { %v325_v18 = vsel %vm323_vm3, %v318_v16, 0 }
  0xa5   : > { %334 = vmatpush.bf16.msra.mxu1 %v325_v18 }
  0xa8   : > { %422 = vmatmul.msk.bf16.vlgmr.msra.gmra.mxu1 %vm319_vm4, %v317_v19 }
 0x125   : > { %v336_v24 = vpop.f32.mrf.mxu1 }
 0x126   : > { %v348_v25 = vmul.f32 %v423_v23, %v336_v24 }
 0x128   : > { %v350_v26 = vsel %vm285_vm1, %v348_v25, 0.0  ;;  %v357_v27 = vmul.f32 %v348_v25, %v336_v24 }
 0x129   : > { %351 = vadd.xlane.f32.xlu1 %v350_v26 }
 0x12a   : > { %v358_v29 = vsel %vm285_vm1, %v357_v27, 0.0 }
 0x12d   : > { %v338_v28 = vpop.f32.mrf.mxu1 }
 0x131   : > { %359 = vadd.xlane.f32.xlu1 %v358_v29 }
 0x19c   : > { %v352_v31 = vpop.xlane.xlu1 %351 }
 0x19d   : > { %v353_v32 = vadd.f32 %v352_v31, %v349_v30 }
 0x19f   : > { %355 = vst.msk [vmem:[%s587_s5] sm:$0xf] %vm354_vm6, %v353_v32 }
 0x1a4   : > { %v360_v34 = vpop.xlane.xlu1 %359 }
 0x1a5   : > { %v361_v35 = vadd.f32 %v360_v34, %v356_v33 }
 0x1a7   : > { %362 = vst.msk [vmem:[%s588_s6] sm:$0xf] %vm354_vm6, %v361_v35 }
 0x1a8 PF: > { %s17_s23 = sadd.s32 1, %s479_s23   ;;  %s589_s21 = smov %s475_s22 }
 0x1a9   : > { %p14_p6 = scmp.ge.s32.totalorder %s17_s23, 4   ;;  %s590_s22 = smov %s592_s24 }
 0x1ab   :  { %16 = sbr.rel (!%p14_p6) target bundleno = 2 (0x2), region = 78 }

</bundles_post_ra>
